<compile_context>
chip_gen: v7x
topology: tpu7x:2x2x1
jax: 0.10.0
libtpu: 0.0.40
codegen_flags: <defaults>
</compile_context>

<pallas_src>
import functools

import jax
import jax.numpy as jnp
from jax.experimental import pallas as pl
from jax.experimental.pallas import tpu as pltpu


def _linear_kernel(x_ref, w_ref, b_ref, o_ref):
    # (TB, F) @ (F, Cp) on the MXU, f32 accumulation, + broadcast (1, Cp) bias.
    acc = jnp.dot(x_ref[...], w_ref[...], preferred_element_type=jnp.float32)
    o_ref[...] = (acc + b_ref[...]).astype(o_ref.dtype)


def simple_nn1_forward(x, w_t, b, *, tile_b=1024):
    """y = x @ w_t + b  (equivalent to torch nn.Linear with weight = w_t.T)."""
    B, F = x.shape
    Fw, C = w_t.shape
    assert F == Fw and b.shape == (C,)

    # Pad the output/lane dimension to a multiple of 128 (lane-dense stores,
    # aligned MXU N tile). Zero columns are sliced off after the kernel.
    Cp = max(128, ((C + 127) // 128) * 128)
    w_pad = jnp.pad(w_t, ((0, 0), (0, Cp - C)))
    b_pad = jnp.pad(b, (0, Cp - C)).reshape(1, Cp)

    bytes_el = jnp.dtype(x.dtype).itemsize
    cost = pl.CostEstimate(
        flops=2 * B * F * Cp,
        transcendentals=0,
        bytes_accessed=(B * F + F * Cp + Cp + B * Cp) * bytes_el,
    )

    if B <= tile_b:
        # Overhead-bound small case: no grid, everything resident in VMEM.
        y_pad = pl.pallas_call(
            _linear_kernel,
            out_shape=jax.ShapeDtypeStruct((B, Cp), x.dtype),
            in_specs=[
                pl.BlockSpec(memory_space=pltpu.MemorySpace.VMEM),
                pl.BlockSpec(memory_space=pltpu.MemorySpace.VMEM),
                pl.BlockSpec(memory_space=pltpu.MemorySpace.VMEM),
            ],
            out_specs=pl.BlockSpec(memory_space=pltpu.MemorySpace.VMEM),
            cost_estimate=cost,
        )(x, w_pad, b_pad)
    else:
        # Large-batch case: tile over B only; weight + bias stay VMEM-resident
        # (index_map returns the same block for every grid step).
        grid = (pl.cdiv(B, tile_b),)
        y_pad = pl.pallas_call(
            _linear_kernel,
            out_shape=jax.ShapeDtypeStruct((B, Cp), x.dtype),
            grid=grid,
            in_specs=[
                pl.BlockSpec((tile_b, F), lambda i: (i, 0)),
                pl.BlockSpec((F, Cp), lambda i: (0, 0)),
                pl.BlockSpec((1, Cp), lambda i: (0, 0)),
            ],
            out_specs=pl.BlockSpec((tile_b, Cp), lambda i: (i, 0)),
            compiler_params=pltpu.CompilerParams(
                dimension_semantics=("parallel",),
                vmem_limit_bytes=64 << 20,
            ),
            cost_estimate=cost,
        )(x, w_pad, b_pad)

    return y_pad[:, :C]


def make_params(key, n_class, data_shape, dtype=jnp.float32):
    """Deterministic init matching SimpleNN1.__init__ shapes."""
    w, h = data_shape
    n_output_bn = ((w // 4 - 8) // 8 + 1) * ((h // 4 - 8) // 8 + 1) * 640
    in_features = n_output_bn + 640
    k_w, k_b = jax.random.split(key)
    bound = 1.0 / jnp.sqrt(in_features)
    # torch stores weight as (n_class, in_features); we keep it transposed.
    weight_t = jax.random.uniform(
        k_w, (in_features, n_class), dtype=dtype, minval=-bound, maxval=bound
    )
    bias = jax.random.uniform(
        k_b, (n_class,), dtype=dtype, minval=-bound, maxval=bound
    )
    return weight_t, bias, in_features


if __name__ == "__main__":
    key = jax.random.PRNGKey(0)
    n_class = 10
    data_shape = (36, 36)  # -> n_output_bn = 640, in_features = 1280

    k_params, k_x1, k_x2 = jax.random.split(key, 3)
    weight_t, bias, in_features = make_params(k_params, n_class, data_shape)

    # 1) Small-batch path (no grid, whole-array VMEM blocks).
    batch = 2
    x_small = jax.random.normal(k_x1, (batch, in_features), dtype=jnp.float32)
    y_small = simple_nn1_forward(x_small, weight_t, bias)
    jax.block_until_ready(y_small)
    y_ref_small = x_small @ weight_t + bias
    assert y_small.shape == (batch, n_class)
    assert jnp.allclose(y_small, y_ref_small, atol=1e-4, rtol=1e-4)

    # 2) Exercise the B-tiled path (grid over batch, weight VMEM-resident).
    batch_big = 256
    x_big = jax.random.normal(k_x2, (batch_big, in_features), dtype=jnp.float32)
    y_big = simple_nn1_forward(x_big, weight_t, bias, tile_b=128)
    jax.block_until_ready(y_big)
    y_ref_big = x_big @ weight_t + bias
    assert y_big.shape == (batch_big, n_class)
    assert jnp.allclose(y_big, y_ref_big, atol=1e-4, rtol=1e-4)

    print("KERNEL_OK")
</pallas_src>

<mosaic_0001>
module attributes {stable_mosaic.version = 11 : i64} {
  func.func @_linear_kernel(%arg0: memref<2x1280xf32, #tpu.memory_space<vmem>>, %arg1: memref<1280x128xf32, #tpu.memory_space<vmem>>, %arg2: memref<1x128xf32, #tpu.memory_space<vmem>>, %arg3: memref<2x128xf32, #tpu.memory_space<vmem>>) attributes {dimension_semantics = [], scalar_prefetch = 0 : i64, scratch_operands = 0 : i64, tpu.core_type = #tpu.core_type<tc>} {
    %c0 = arith.constant 0 : index
    %c0_0 = arith.constant 0 : index
    %0 = vector.load %arg0[%c0, %c0_0] : memref<2x1280xf32, #tpu.memory_space<vmem>>, vector<2x1280xf32>
    %c0_1 = arith.constant 0 : index
    %c0_2 = arith.constant 0 : index
    %1 = vector.load %arg1[%c0_1, %c0_2] : memref<1280x128xf32, #tpu.memory_space<vmem>>, vector<1280x128xf32>
    %cst = arith.constant dense<0.000000e+00> : vector<2x128xf32>
    %2 = tpu.matmul %0, %1, %cst {dimension_numbers = #tpu.dot_dimension_numbers<[1], [0], [0], [1], [0, 0, 1, 1], [], []>} : vector<2x1280xf32>, vector<1280x128xf32>, vector<2x128xf32> -> vector<2x128xf32>
    %c0_3 = arith.constant 0 : index
    %c0_4 = arith.constant 0 : index
    %3 = vector.load %arg2[%c0_3, %c0_4] : memref<1x128xf32, #tpu.memory_space<vmem>>, vector<1x128xf32>
    %4 = vector.broadcast %3 : vector<1x128xf32> to vector<2x128xf32>
    %5 = arith.addf %2, %4 : vector<2x128xf32>
    %c0_5 = arith.constant 0 : index
    %c0_6 = arith.constant 0 : index
    %6 = vector.load %arg3[%c0_5, %c0_6] : memref<2x128xf32, #tpu.memory_space<vmem>>, vector<2x128xf32>
    tpu.vector_store %arg3[%c0_5, %c0_6], %5 {strides = array<i32>} : memref<2x128xf32, #tpu.memory_space<vmem>>, vector<2x128xf32>,
    return
  }
}

</mosaic_0001>

<bundles_post_ra>
// kernel: tpu_custom_call.1
= control target key start
LH: loop header
LB: loop body
LE: loop exit
PB: predicated region body
PF: predicated region fallthrough
CT: control target
= control target key end

     0   :  { %8 = vsyncpa [#allocation3], 0  ;;  %s1143_s0 = inlined_call_operand.hbm [shape: f32[2,1280], index: 0, kind: input, shape index: {}]   ;;  %s1144_s1 = inlined_call_operand.hbm [shape: f32[1280,128], index: 1, kind: input, shape index: {}]   ;;  %s1145_s2 = inlined_call_operand.vmem [shape: f32[1,128], index: 2, kind: input, shape index: {}]   ;;  %s1146_s3 = inlined_call_operand.hbm [shape: f32[2,128], index: 3, kind: output, shape index: {}]  }
   0x1   :  { %9 = vsyncpa [#allocation6], 0 }
   0x2   :  { %10 = vsyncpa [#allocation4], 0  ;;  %s1050_s12 = smov [#allocation2]   ;;  %s1051_s14 = smov [#allocation5]  }
   0x3   :  { %s17_s13 = sshll.u32 %s1050_s12, 4  ;;  %s26_s15 = sshll.u32 %s1051_s14, 4  ;;  %s18_s13 = int_to_ptr.vmem [resolvable:$true] %s17_s13  ;;  %s1076_s15 = int_to_ptr.vmem [resolvable:$true] %s26_s15 }
   0x4   :  { %s978_s18 = scalar_lea.hbm %s1143_s0, 320 }
   0x5   :  { %p979_p0 = scmp.ne.s32.totalorder %s1143_s0, %s978_s18  ;;  %p982_p1 = scmp.lt.u32.totalorder %s978_s18, %s1143_s0 }
   0x7   :  { %p984_p2 = pnand %p982_p1, %p979_p0 }
   0x9   :  { %987 = shalt.err (!%p984_p2)
}
   0xa   :  { %s988_s23 = scalar_lea.vmem %s18_s13, 320  ;;  %p993_p4 = scmp.lt.s32.totalorder %s18_s13, %s18_s13 }
   0xb   :  { %p989_p3 = scmp.ne.s32.totalorder %s18_s13, %s988_s23  ;;  %p994_p5 = scmp.lt.s32.totalorder %s988_s23, %s988_s23 }
   0xd   :  { %p995_p6 = por %p994_p5, %p993_p4 }
   0xf   :  { %p996_p7 = pnand %p995_p6, %p989_p3 }
  0x11   :  { %999 = shalt.err (!%p996_p7)
}
  0x12   :  { %20 = dma.hbm_to_vmem [thread:$0]  %s1143_s0, 320, %s18_s13, [#allocation3]  }
  0x13   :  { %s1000_s28 = scalar_lea.hbm %s1144_s1, 20480 }
  0x14   :  { %p1001_p8 = scmp.ne.s32.totalorder %s1144_s1, %s1000_s28  ;;  %p1004_p9 = scmp.lt.u32.totalorder %s1000_s28, %s1144_s1 }
  0x16   :  { %p1006_p10 = pnand %p1004_p9, %p1001_p8 }
  0x18   :  { %1009 = shalt.err (!%p1006_p10)
}
  0x19   :  { %s1010_s6 = scalar_lea.vmem %s1076_s15, 20480  ;;  %p1015_p12 = scmp.lt.s32.totalorder %s1076_s15, %s1076_s15 }
  0x1a   :  { %p1011_p11 = scmp.ne.s32.totalorder %s1076_s15, %s1010_s6  ;;  %p1016_p13 = scmp.lt.s32.totalorder %s1010_s6, %s1010_s6 }
  0x1c   :  { %p1017_p0 = por %p1016_p13, %p1015_p12 }
  0x1e   :  { %p1018_p1 = pnand %p1017_p0, %p1011_p11 }
  0x20   :  { %1021 = shalt.err (!%p1018_p1)
}
  0x21   :  { %s1052_s0 = smov 128   ;;  %s1053_s7 = smov 8  }
  0x22   :  { %32 = dma.hbm_to_vmem [thread:$0]  %s1144_s1, 20480, %s1076_s15, [#allocation6], %s1052_s0, %s1052_s0, %s1053_s7  }
  0x23   :  { %1044 = dma.done.wait [#allocation3], 320  }
  0x24   :  { %1045 = vsyncadd [#allocation3], 4294966976 }
  0x25   :  { %1046 = dma.done.wait [#allocation6], 20480  }
  0x26   :  { %1047 = vsyncadd [#allocation6], 4294946816  ;;  %v60_v0 = vld [vmem:[#allocation5 + $0x80] sm:$0xff]  ;;  %v61_v1 = vld [vmem:[#allocation5 + $0x88] sm:$0xff]  ;;  %v1054_v43 = vmov 1983009808   ;;  %v218_v45 = vlaneseq }
  0x27   :  { %v44_v2 = vld [vmem:[#allocation5] sm:$0xff]  ;;  %v810_v3 = vpack.c.bf16 %v61_v1, %v60_v0  ;;  %v45_v4 = vld [vmem:[#allocation5 + $0x8] sm:$0xff]  ;;  %v62_v11 = vld [vmem:[#allocation5 + $0x90] sm:$0xff]  ;;  %v216_v44 = vunpack.c.l.s4 %v1054_v43  ;;  %s1055_s11 = smov [#allocation7]  }
  0x28   :  { %v92_v5 = vld [vmem:[#allocation5 + $0x180] sm:$0xff]  ;;  %v93_v6 = vld [vmem:[#allocation5 + $0x188] sm:$0xff]  ;;  %v812_v7 = vpack.c.bf16 %v45_v4, %v44_v2  ;;  %v63_v13 = vld [vmem:[#allocation5 + $0x98] sm:$0xff]  ;;  %v219_v60 = vshrl.u32 %v218_v45, 7  ;;  %s623_s12 = sshll.u32 %s1055_s11, 4  ;;  %s624_s12 = int_to_ptr.vmem [resolvable:$true] %s623_s12 }
  0x29   :  { %v842_v8 = vpack.c.bf16 %v93_v6, %v92_v5  ;;  %v76_v9 = vld [vmem:[#allocation5 + $0x100] sm:$0xff]  ;;  %v77_v10 = vld [vmem:[#allocation5 + $0x108] sm:$0xff]  ;;  %811 = vmatprep.subr.bf16.mxu0 %v810_v3  ;;  %v46_v14 = vld [vmem:[#allocation5 + $0x10] sm:$0xff]  ;;  %v814_v16 = vpack.c.bf16 %v63_v13, %v62_v11  ;;  %v217_v59 = vunpack.c.0.s8 %v216_v44  ;;  %p1027_p3 = scmp.lt.s32.totalorder %s624_s12, %s624_s12 }
  0x2a   :  { %v844_v12 = vpack.c.bf16 %v77_v10, %v76_v9  ;;  %v47_v15 = vld [vmem:[#allocation5 + $0x18] sm:$0xff]  ;;  %813 = vmatpush3.bf16.msra.mxu0 %v812_v7  ;;  %v94_v18 = vld [vmem:[#allocation5 + $0x190] sm:$0xff]  ;;  %v64_v23 = vld [vmem:[#allocation5 + $0xa0] sm:$0xff] }
  0x2b   :  { %843 = vmatprep.subr.bf16.mxu1 %v842_v8  ;;  %v816_v17 = vpack.c.bf16 %v47_v15, %v46_v14  ;;  %v95_v19 = vld [vmem:[#allocation5 + $0x198] sm:$0xff]  ;;  %v78_v20 = vld [vmem:[#allocation5 + $0x110] sm:$0xff]  ;;  %v65_v24 = vld [vmem:[#allocation5 + $0xa8] sm:$0xff]  ;;  %815 = vmatprep.subr.bf16.mxu0 %v814_v16  ;;  %v1107_v10 = vsub.s32 %v217_v59, %v219_v60 }
  0x2c   :  { %845 = vmatpush3.bf16.msra.mxu1 %v844_v12  ;;  %v846_v21 = vpack.c.bf16 %v95_v19, %v94_v18  ;;  %v79_v22 = vld [vmem:[#allocation5 + $0x118] sm:$0xff]  ;;  %v818_v26 = vpack.c.bf16 %v65_v24, %v64_v23  ;;  %v48_v27 = vld [vmem:[#allocation5 + $0x20] sm:$0xff]  ;;  %v49_v28 = vld [vmem:[#allocation5 + $0x28] sm:$0xff] }
  0x2d   :  { %v848_v25 = vpack.c.bf16 %v79_v22, %v78_v20  ;;  %v96_v29 = vld [vmem:[#allocation5 + $0x1a0] sm:$0xff]  ;;  %v97_v30 = vld [vmem:[#allocation5 + $0x1a8] sm:$0xff]  ;;  %v820_v33 = vpack.c.bf16 %v49_v28, %v48_v27  ;;  %v66_v35 = vld [vmem:[#allocation5 + $0xb0] sm:$0xff] }
  0x2e   :  { %847 = vmatprep.subr.bf16.mxu1 %v846_v21  ;;  %v80_v31 = vld [vmem:[#allocation5 + $0x120] sm:$0xff]  ;;  %v81_v32 = vld [vmem:[#allocation5 + $0x128] sm:$0xff]  ;;  %817 = vmatpush3.bf16.msra.mxu0 %v816_v17  ;;  %v850_v34 = vpack.c.bf16 %v97_v30, %v96_v29  ;;  %v67_v36 = vld [vmem:[#allocation5 + $0xb8] sm:$0xff] }
  0x2f   :  { %v50_v37 = vld [vmem:[#allocation5 + $0x30] sm:$0xff]  ;;  %819 = vmatprep.subr.bf16.mxu0 %v818_v26  ;;  %v852_v38 = vpack.c.bf16 %v81_v32, %v80_v31  ;;  %v822_v39 = vpack.c.bf16 %v67_v36, %v66_v35  ;;  %v51_v40 = vld [vmem:[#allocation5 + $0x38] sm:$0xff]  ;;  %v68_v49 = vld [vmem:[#allocation5 + $0xc0] sm:$0xff] }
  0x30   :  { %849 = vmatpush3.bf16.msra.mxu1 %v848_v25  ;;  %v98_v41 = vld [vmem:[#allocation5 + $0x1b0] sm:$0xff]  ;;  %v99_v42 = vld [vmem:[#allocation5 + $0x1b8] sm:$0xff]  ;;  %v69_v50 = vld [vmem:[#allocation5 + $0xc8] sm:$0xff]  ;;  %v824_v51 = vpack.c.bf16 %v51_v40, %v50_v37 }
  0x31   :  { %851 = vmatprep.subr.bf16.mxu1 %v850_v34  ;;  %v854_v46 = vpack.c.bf16 %v99_v42, %v98_v41  ;;  %v82_v47 = vld [vmem:[#allocation5 + $0x130] sm:$0xff]  ;;  %v83_v48 = vld [vmem:[#allocation5 + $0x138] sm:$0xff]  ;;  %v100_v52 = vld [vmem:[#allocation5 + $0x1c0] sm:$0xff]  ;;  %v826_v55 = vpack.c.bf16 %v69_v50, %v68_v49 }
  0x32   :  { %821 = vmatpush3.bf16.msra.mxu0 %v820_v33  ;;  %v101_v53 = vld [vmem:[#allocation5 + $0x1c8] sm:$0xff]  ;;  %v856_v54 = vpack.c.bf16 %v83_v48, %v82_v47  ;;  %v52_v56 = vld [vmem:[#allocation5 + $0x40] sm:$0xff]  ;;  %v70_v63 = vld [vmem:[#allocation5 + $0xd0] sm:$0xff] }
  0x33   :  { %823 = vmatprep.subr.bf16.mxu0 %v822_v39  ;;  %v53_v57 = vld [vmem:[#allocation5 + $0x48] sm:$0xff]  ;;  %v84_v58 = vld [vmem:[#allocation5 + $0x140] sm:$0xff]  ;;  %v858_v61 = vpack.c.bf16 %v101_v53, %v100_v52  ;;  %v71_v0 = vld [vmem:[#allocation5 + $0xd8] sm:$0xff] }
  0x34   :  { %853 = vmatpush3.bf16.msra.mxu1 %v852_v38  ;;  %v85_v62 = vld [vmem:[#allocation5 + $0x148] sm:$0xff]  ;;  %v102_v1 = vld [vmem:[#allocation5 + $0x1d0] sm:$0xff]  ;;  %v103_v2 = vld [vmem:[#allocation5 + $0x1d8] sm:$0xff]  ;;  %v828_v3 = vpack.c.bf16 %v53_v57, %v52_v56  ;;  %v830_v6 = vpack.c.bf16 %v71_v0, %v70_v63 }
  0x35   :  { %855 = vmatprep.subr.bf16.mxu1 %v854_v46  ;;  %v54_v4 = vld [vmem:[#allocation5 + $0x50] sm:$0xff]  ;;  %v860_v5 = vpack.c.bf16 %v85_v62, %v84_v58  ;;  %v55_v7 = vld [vmem:[#allocation5 + $0x58] sm:$0xff]  ;;  %v862_v11 = vpack.c.bf16 %v103_v2, %v102_v1  ;;  %v72_v12 = vld [vmem:[#allocation5 + $0xe0] sm:$0xff] }
  0x36   :  { %825 = vmatpush3.bf16.msra.mxu0 %v824_v51  ;;  %v86_v8 = vld [vmem:[#allocation5 + $0x150] sm:$0xff]  ;;  %v87_v9 = vld [vmem:[#allocation5 + $0x158] sm:$0xff]  ;;  %v73_v13 = vld [vmem:[#allocation5 + $0xe8] sm:$0xff]  ;;  %v832_v16 = vpack.c.bf16 %v55_v7, %v54_v4 }
  0x37   :  { %827 = vmatprep.subr.bf16.mxu0 %v826_v55  ;;  %v104_v14 = vld [vmem:[#allocation5 + $0x1e0] sm:$0xff]  ;;  %v105_v15 = vld [vmem:[#allocation5 + $0x1e8] sm:$0xff]  ;;  %v864_v17 = vpack.c.bf16 %v87_v9, %v86_v8  ;;  %v834_v19 = vpack.c.bf16 %v73_v13, %v72_v12  ;;  %v74_v27 = vld [vmem:[#allocation5 + $0xf0] sm:$0xff] }
  0x38   :  { %857 = vmatpush3.bf16.msra.mxu1 %v856_v54  ;;  %v41_v18 = vld [vmem:[#allocation2] sm:$0xff]  ;;  %v56_v20 = vld [vmem:[#allocation5 + $0x60] sm:$0xff]  ;;  %v866_v25 = vpack.c.bf16 %v105_v15, %v104_v14  ;;  %v75_v28 = vld [vmem:[#allocation5 + $0xf8] sm:$0xff] }
  0x39   :  { %859 = vmatprep.subr.bf16.mxu1 %v858_v61  ;;  %v57_v21 = vld [vmem:[#allocation5 + $0x68] sm:$0xff]  ;;  %v88_v22 = vld [vmem:[#allocation5 + $0x160] sm:$0xff]  ;;  %v221_v23 = vrot.slane %v41_v18, %v1107_v10  ;;  %v214_v24 = vcombine.high %v41_v18, %v41_v18  ;;  %v106_v29 = vld [vmem:[#allocation5 + $0x1f0] sm:$0xff]  ;;  %v838_v35 = vpack.c.bf16 %v75_v28, %v74_v27 }
  0x3a   :  { %829 = vmatpush3.bf16.msra.mxu0 %v828_v3  ;;  %v89_v26 = vld [vmem:[#allocation5 + $0x168] sm:$0xff]  ;;  %v107_v30 = vld [vmem:[#allocation5 + $0x1f8] sm:$0xff]  ;;  %v836_v33 = vpack.c.bf16 %v57_v21, %v56_v20  ;;  %v58_v36 = vld [vmem:[#allocation5 + $0x70] sm:$0xff] }
  0x3b   :  { %831 = vmatprep.subr.bf16.mxu0 %v830_v6  ;;  %v229_v31 = vcombine.high %v221_v23, %v221_v23  ;;  %v228_v32 = vrot.slane %v214_v24, %v1107_v10  ;;  %v868_v34 = vpack.c.bf16 %v89_v26, %v88_v22  ;;  %v59_v37 = vld [vmem:[#allocation5 + $0x78] sm:$0xff]  ;;  %v90_v38 = vld [vmem:[#allocation5 + $0x170] sm:$0xff]  ;;  %v870_v40 = vpack.c.bf16 %v107_v30, %v106_v29  ;;  %v124_v42 = vld [vmem:[#allocation5 + $0x280] sm:$0xff] }
  0x3c   :  { %861 = vmatpush3.bf16.msra.mxu1 %v860_v5  ;;  %v91_v41 = vld [vmem:[#allocation5 + $0x178] sm:$0xff]  ;;  %v125_v43 = vld [vmem:[#allocation5 + $0x288] sm:$0xff]  ;;  %v156_v44 = vld [vmem:[#allocation5 + $0x380] sm:$0xff]  ;;  %v840_v46 = vpack.c.bf16 %v59_v37, %v58_v36 }
  0x3d   :  { %863 = vmatprep.subr.bf16.mxu1 %v862_v11  ;;  %v230_v39 = vcombine.high %v228_v32, %v228_v32  ;;  %330 = vmatprep.mubr.f32.mxu0 %v229_v31  ;;  %v157_v45 = vld [vmem:[#allocation5 + $0x388] sm:$0xff]  ;;  %v872_v47 = vpack.c.bf16 %v91_v41, %v90_v38  ;;  %v874_v48 = vpack.c.bf16 %v125_v43, %v124_v42  ;;  %v108_v49 = vld [vmem:[#allocation5 + $0x200] sm:$0xff]  ;;  %v126_v54 = vld [vmem:[#allocation5 + $0x290] sm:$0xff] }
  0x3e   :  { %833 = vmatpush3.bf16.msra.mxu0 %v832_v16  ;;  %v109_v50 = vld [vmem:[#allocation5 + $0x208] sm:$0xff]  ;;  %v140_v51 = vld [vmem:[#allocation5 + $0x300] sm:$0xff]  ;;  %v906_v52 = vpack.c.bf16 %v157_v45, %v156_v44  ;;  %v127_v55 = vld [vmem:[#allocation5 + $0x298] sm:$0xff] }
  0x3f   :  { %835 = vmatprep.subr.bf16.mxu0 %v834_v19  ;;  %400 = vmatprep.mubr.f32.mxu1 %v230_v39  ;;  %v141_v53 = vld [vmem:[#allocation5 + $0x308] sm:$0xff]  ;;  %v158_v56 = vld [vmem:[#allocation5 + $0x390] sm:$0xff]  ;;  %v159_v57 = vld [vmem:[#allocation5 + $0x398] sm:$0xff]  ;;  %v876_v58 = vpack.c.bf16 %v109_v50, %v108_v49  ;;  %v878_v60 = vpack.c.bf16 %v127_v55, %v126_v54 }
  0x40   :  { %865 = vmatpush3.bf16.msra.mxu1 %v864_v17  ;;  %v908_v59 = vpack.c.bf16 %v141_v53, %v140_v51  ;;  %v110_v61 = vld [vmem:[#allocation5 + $0x210] sm:$0xff]  ;;  %v111_v62 = vld [vmem:[#allocation5 + $0x218] sm:$0xff]  ;;  %v910_v0 = vpack.c.bf16 %v159_v57, %v158_v56  ;;  %v128_v2 = vld [vmem:[#allocation5 + $0x2a0] sm:$0xff] }
  0x41   :  { %867 = vmatprep.subr.bf16.mxu1 %v866_v25  ;;  %v142_v63 = vld [vmem:[#allocation5 + $0x310] sm:$0xff]  ;;  %v143_v1 = vld [vmem:[#allocation5 + $0x318] sm:$0xff]  ;;  %v129_v3 = vld [vmem:[#allocation5 + $0x2a8] sm:$0xff]  ;;  %v880_v6 = vpack.c.bf16 %v111_v62, %v110_v61 }
  0x42   :  { %837 = vmatpush3.bf16.msra.mxu0 %v836_v33  ;;  %v160_v4 = vld [vmem:[#allocation5 + $0x3a0] sm:$0xff]  ;;  %v161_v5 = vld [vmem:[#allocation5 + $0x3a8] sm:$0xff]  ;;  %v912_v7 = vpack.c.bf16 %v143_v1, %v142_v63  ;;  %v882_v8 = vpack.c.bf16 %v129_v3, %v128_v2  ;;  %v130_v15 = vld [vmem:[#allocation5 + $0x2b0] sm:$0xff] }
  0x43   :  { %839 = vmatprep.subr.bf16.mxu0 %v838_v35  ;;  %v112_v9 = vld [vmem:[#allocation5 + $0x220] sm:$0xff]  ;;  %v113_v11 = vld [vmem:[#allocation5 + $0x228] sm:$0xff]  ;;  %v914_v13 = vpack.c.bf16 %v161_v5, %v160_v4  ;;  %v131_v16 = vld [vmem:[#allocation5 + $0x2b8] sm:$0xff] }
  0x44   :  { %869 = vmatpush3.bf16.msra.mxu1 %v868_v34  ;;  %v144_v12 = vld [vmem:[#allocation5 + $0x320] sm:$0xff]  ;;  %v145_v14 = vld [vmem:[#allocation5 + $0x328] sm:$0xff]  ;;  %v162_v17 = vld [vmem:[#allocation5 + $0x3b0] sm:$0xff]  ;;  %v884_v19 = vpack.c.bf16 %v113_v11, %v112_v9  ;;  %v886_v22 = vpack.c.bf16 %v131_v16, %v130_v15 }
  0x45   :  { %871 = vmatprep.subr.bf16.mxu1 %v870_v40  ;;  %v163_v18 = vld [vmem:[#allocation5 + $0x3b8] sm:$0xff]  ;;  %v114_v20 = vld [vmem:[#allocation5 + $0x230] sm:$0xff]  ;;  %v916_v21 = vpack.c.bf16 %v145_v14, %v144_v12  ;;  %v132_v27 = vld [vmem:[#allocation5 + $0x2c0] sm:$0xff] }
  0x46   :  { %841 = vmatpush3.bf16.msra.mxu0 %v840_v46  ;;  %v146_v24 = vld [vmem:[#allocation5 + $0x330] sm:$0xff]  ;;  %v147_v25 = vld [vmem:[#allocation5 + $0x338] sm:$0xff]  ;;  %v918_v26 = vpack.c.bf16 %v163_v18, %v162_v17  ;;  %v133_v28 = vld [vmem:[#allocation5 + $0x2c8] sm:$0xff] }
  0x47   :  { %875 = vmatprep.subr.bf16.mxu0 %v874_v48  ;;  %v42_v29 = vld [vmem:[#allocation2 + $0x8] sm:$0xff]  ;;  %v164_v30 = vld [vmem:[#allocation5 + $0x3c0] sm:$0xff]  ;;  %v165_v31 = vld [vmem:[#allocation5 + $0x3c8] sm:$0xff]  ;;  %v920_v35 = vpack.c.bf16 %v147_v25, %v146_v24  ;;  %v890_v36 = vpack.c.bf16 %v133_v28, %v132_v27 }
  0x48   :  { %873 = vmatpush3.bf16.msra.mxu1 %v872_v47  ;;  %v231_v33 = vcombine.high %v42_v29, %v42_v29  ;;  %v116_v37 = vld [vmem:[#allocation5 + $0x240] sm:$0xff]  ;;  %v117_v38 = vld [vmem:[#allocation5 + $0x248] sm:$0xff]  ;;  %v922_v42 = vpack.c.bf16 %v165_v31, %v164_v30  ;;  %v134_v44 = vld [vmem:[#allocation5 + $0x2d0] sm:$0xff] }
  0x49   :  { %907 = vmatprep.subr.bf16.mxu1 %v906_v52  ;;  %331 = vmatmul.mubr.f32.vlgmr.msra.gmra.mrb[0].mxu0 %v221_v23  ;;  %v115_v23 = vld [vmem:[#allocation5 + $0x238] sm:$0xff]  ;;  %v148_v39 = vld [vmem:[#allocation5 + $0x340] sm:$0xff]  ;;  %v149_v43 = vld [vmem:[#allocation5 + $0x348] sm:$0xff]  ;;  %v892_v49 = vpack.c.bf16 %v117_v38, %v116_v37 }
  0x4a   :  { %877 = vmatpush3.bf16.msra.mxu0 %v876_v58  ;;  %v888_v34 = vpack.c.bf16 %v115_v23, %v114_v20  ;;  %v1117_v41 = vrot.slane %v231_v33, %v1107_v10  ;;  %v135_v45 = vld [vmem:[#allocation5 + $0x2d8] sm:$0xff]  ;;  %v166_v46 = vld [vmem:[#allocation5 + $0x3d0] sm:$0xff]  ;;  %v924_v50 = vpack.c.bf16 %v149_v43, %v148_v39  ;;  %v136_v56 = vld [vmem:[#allocation5 + $0x2e0] sm:$0xff] }
  0x4b   :  { %401 = vmatmul.mubr.f32.vlgmr.msra.gmra.mrb[0].mxu1 %v228_v32  ;;  %879 = vmatprep.subr.bf16.mxu0 %v878_v60  ;;  %v1112_v32 = vrot.slane %v42_v29, %v1107_v10  ;;  %v167_v47 = vld [vmem:[#allocation5 + $0x3d8] sm:$0xff]  ;;  %v894_v51 = vpack.c.bf16 %v135_v45, %v134_v44  ;;  %v118_v52 = vld [vmem:[#allocation5 + $0x250] sm:$0xff]  ;;  %v137_v57 = vld [vmem:[#allocation5 + $0x2e8] sm:$0xff] }
  0x4c   :  { %909 = vmatpush3.bf16.msra.mxu1 %v908_v59  ;;  %v247_v48 = vcombine.high %v1117_v41, %v1117_v41  ;;  %v119_v10 = vld [vmem:[#allocation5 + $0x258] sm:$0xff]  ;;  %v150_v53 = vld [vmem:[#allocation5 + $0x350] sm:$0xff]  ;;  %v926_v54 = vpack.c.bf16 %v167_v47, %v166_v46  ;;  %v168_v58 = vld [vmem:[#allocation5 + $0x3e0] sm:$0xff]  ;;  %v898_v62 = vpack.c.bf16 %v137_v57, %v136_v56 }
  0x4d   :  { %911 = vmatprep.subr.bf16.mxu1 %v910_v0  ;;  %v246_v40 = vcombine.high %v1112_v32, %v1112_v32  ;;  %v151_v55 = vld [vmem:[#allocation5 + $0x358] sm:$0xff]  ;;  %v169_v59 = vld [vmem:[#allocation5 + $0x3e8] sm:$0xff]  ;;  %v896_v60 = vpack.c.bf16 %v119_v10, %v118_v52  ;;  %v120_v63 = vld [vmem:[#allocation5 + $0x260] sm:$0xff] }
  0x4e   :  { %881 = vmatpush3.bf16.msra.mxu0 %v880_v6  ;;  %540 = vmatprep.mubr.f32.mxu1 %v247_v48  ;;  %v928_v61 = vpack.c.bf16 %v151_v55, %v150_v53  ;;  %v121_v0 = vld [vmem:[#allocation5 + $0x268] sm:$0xff]  ;;  %v152_v1 = vld [vmem:[#allocation5 + $0x360] sm:$0xff]  ;;  %v930_v2 = vpack.c.bf16 %v169_v59, %v168_v58  ;;  %v138_v4 = vld [vmem:[#allocation5 + $0x2f0] sm:$0xff] }
  0x4f   :  { %883 = vmatprep.subr.bf16.mxu0 %v882_v8  ;;  %470 = vmatprep.mubr.f32.mxu0 %v246_v40  ;;  %v153_v3 = vld [vmem:[#allocation5 + $0x368] sm:$0xff]  ;;  %v139_v5 = vld [vmem:[#allocation5 + $0x2f8] sm:$0xff]  ;;  %v170_v6 = vld [vmem:[#allocation5 + $0x3f0] sm:$0xff]  ;;  %v900_v8 = vpack.c.bf16 %v121_v0, %v120_v63 }
  0x50   :  { %913 = vmatpush3.bf16.msra.mxu1 %v912_v7  ;;  %v171_v7 = vld [vmem:[#allocation5 + $0x3f8] sm:$0xff]  ;;  %v932_v9 = vpack.c.bf16 %v153_v3, %v152_v1  ;;  %v902_v11 = vpack.c.bf16 %v139_v5, %v138_v4  ;;  %v122_v12 = vld [vmem:[#allocation5 + $0x270] sm:$0xff]  ;;  %v188_v17 = vld [vmem:[#allocation5 + $0x480] sm:$0xff] }
  0x51   :  { %915 = vmatprep.subr.bf16.mxu1 %v914_v13  ;;  %v123_v13 = vld [vmem:[#allocation5 + $0x278] sm:$0xff]  ;;  %v154_v14 = vld [vmem:[#allocation5 + $0x370] sm:$0xff]  ;;  %v934_v15 = vpack.c.bf16 %v171_v7, %v170_v6  ;;  %v189_v18 = vld [vmem:[#allocation5 + $0x488] sm:$0xff] }
  0x52   :  { %885 = vmatpush3.bf16.msra.mxu0 %v884_v19  ;;  %v155_v16 = vld [vmem:[#allocation5 + $0x378] sm:$0xff]  ;;  %v904_v19 = vpack.c.bf16 %v123_v13, %v122_v12  ;;  %v173_v23 = vld [vmem:[#allocation5 + $0x408] sm:$0xff]  ;;  %v190_v24 = vld [vmem:[#allocation5 + $0x490] sm:$0xff] }
  0x53   :  { %887 = vmatprep.subr.bf16.mxu0 %v886_v22  ;;  %v936_v20 = vpack.c.bf16 %v155_v16, %v154_v14  ;;  %v172_v22 = vld [vmem:[#allocation5 + $0x400] sm:$0xff]  ;;  %v191_v25 = vld [vmem:[#allocation5 + $0x498] sm:$0xff]  ;;  %v174_v29 = vld [vmem:[#allocation5 + $0x410] sm:$0xff] }
  0x54   :  { %917 = vmatpush3.bf16.msra.mxu1 %v916_v21  ;;  %v938_v21 = vpack.c.bf16 %v189_v18, %v188_v17  ;;  %v940_v27 = vpack.c.bf16 %v173_v23, %v172_v22  ;;  %v942_v28 = vpack.c.bf16 %v191_v25, %v190_v24  ;;  %v175_v30 = vld [vmem:[#allocation5 + $0x418] sm:$0xff]  ;;  %v192_v33 = vld [vmem:[#allocation5 + $0x4a0] sm:$0xff]  ;;  %v177_v38 = vld [vmem:[#allocation5 + $0x428] sm:$0xff] }
  0x55   :  { %919 = vmatprep.subr.bf16.mxu1 %v918_v26  ;;  %v1121_v26 = vld.sshfl [vmem:[#allocation2 + $0x10] sm:$0x33 pattern:$0x76325410]  ;;  %v176_v37 = vld [vmem:[#allocation5 + $0x420] sm:$0xff]  ;;  %v194_v39 = vld [vmem:[#allocation5 + $0x4b0] sm:$0xff] }
  0x56   :  { %889 = vmatpush3.bf16.msra.mxu0 %v888_v34  ;;  %v255_v31 = vcombine.high %v1121_v26, %v1121_v26  ;;  %v193_v34 = vld [vmem:[#allocation5 + $0x4a8] sm:$0xff]  ;;  %v195_v40 = vld [vmem:[#allocation5 + $0x4b8] sm:$0xff]  ;;  %v178_v44 = vld [vmem:[#allocation5 + $0x430] sm:$0xff] }
  0x57   :  { %891 = vmatprep.subr.bf16.mxu0 %v890_v36  ;;  %v946_v36 = vpack.c.bf16 %v193_v34, %v192_v33  ;;  %v950_v43 = vpack.c.bf16 %v195_v40, %v194_v39  ;;  %v179_v45 = vld [vmem:[#allocation5 + $0x438] sm:$0xff]  ;;  %v196_v46 = vld [vmem:[#allocation5 + $0x4c0] sm:$0xff]  ;;  %v197_v47 = vld [vmem:[#allocation5 + $0x4c8] sm:$0xff] }
  0x58   :  { %921 = vmatpush3.bf16.msra.mxu1 %v920_v35  ;;  %v944_v35 = vpack.c.bf16 %v175_v30, %v174_v29  ;;  %v180_v48 = vld [vmem:[#allocation5 + $0x440] sm:$0xff]  ;;  %v182_v53 = vld [vmem:[#allocation5 + $0x450] sm:$0xff]  ;;  %v201_v56 = vld [vmem:[#allocation5 + $0x4e8] sm:$0xff] }
  0x59   :  { %923 = vmatprep.subr.bf16.mxu1 %v922_v42  ;;  %v948_v42 = vpack.c.bf16 %v177_v38, %v176_v37  ;;  %v200_v55 = vld [vmem:[#allocation5 + $0x4e0] sm:$0xff]  ;;  %v186_v1 = vld [vmem:[#allocation5 + $0x470] sm:$0xff]  ;;  %v633_v5 = vld [vmem:[%s1145_s2] ss:$0 sm:$0xff]  ;;  %s1022_s2 = scalar_lea.vmem %s624_s12, 32 }
  0x5a   :  { %893 = vmatpush3.bf16.msra.mxu0 %v892_v49  ;;  %v181_v49 = vld [vmem:[#allocation5 + $0x448] sm:$0xff]  ;;  %v962_v58 = vpack.c.bf16 %v201_v56, %v200_v55  ;;  %v184_v59 = vld [vmem:[#allocation5 + $0x460] sm:$0xff]  ;;  %p1023_p2 = scmp.ne.s32.totalorder %s624_s12, %s1022_s2  ;;  %p1028_p4 = scmp.lt.s32.totalorder %s1022_s2, %s1022_s2 }
  0x5b   :  { %895 = vmatprep.subr.bf16.mxu0 %v894_v51  ;;  %v199_v51 = vld [vmem:[#allocation5 + $0x4d8] sm:$0xff]  ;;  %v956_v52 = vpack.c.bf16 %v181_v49, %v180_v48 }
  0x5c   :  { %925 = vmatpush3.bf16.msra.mxu1 %v924_v50  ;;  %v198_v50 = vld [vmem:[#allocation5 + $0x4d0] sm:$0xff]  ;;  %p1029_p5 = por %p1028_p4, %p1027_p3 }
  0x5d   :  { %927 = vmatprep.subr.bf16.mxu1 %v926_v54  ;;  %v958_v10 = vpack.c.bf16 %v199_v51, %v198_v50  ;;  %v183_v54 = vld [vmem:[#allocation5 + $0x458] sm:$0xff] }
  0x5e   :  { %897 = vmatpush3.bf16.msra.mxu0 %v896_v60  ;;  %v960_v57 = vpack.c.bf16 %v183_v54, %v182_v53  ;;  %v185_v60 = vld [vmem:[#allocation5 + $0x468] sm:$0xff]  ;;  %p1030_p6 = pnand %p1029_p5, %p1023_p2 }
  0x5f   :  { %899 = vmatprep.subr.bf16.mxu0 %v898_v62  ;;  %v203_v62 = vld [vmem:[#allocation5 + $0x4f8] sm:$0xff]  ;;  %v964_v63 = vpack.c.bf16 %v185_v60, %v184_v59 }
  0x60   :  { %929 = vmatpush3.bf16.msra.mxu1 %v928_v61  ;;  %v202_v61 = vld [vmem:[#allocation5 + $0x4f0] sm:$0xff] }
  0x61   :  { %931 = vmatprep.subr.bf16.mxu1 %v930_v2  ;;  %v966_v0 = vpack.c.bf16 %v203_v62, %v202_v61  ;;  %v187_v2 = vld [vmem:[#allocation5 + $0x478] sm:$0xff] }
  0x62   :  { %901 = vmatpush3.bf16.msra.mxu0 %v900_v8  ;;  %v968_v3 = vpack.c.bf16 %v187_v2, %v186_v1 }
  0x63   :  { %903 = vmatprep.subr.bf16.mxu0 %v902_v11 }
  0x64   :  { %933 = vmatpush3.bf16.msra.mxu1 %v932_v9 }
  0x65   :  { %935 = vmatprep.subr.bf16.mxu1 %v934_v15 }
  0x66   :  { %905 = vmatpush3.bf16.msra.mxu0 %v904_v19 }
  0x67   :  { %939 = vmatprep.subr.bf16.mxu0 %v938_v21 }
  0x68   :  { %937 = vmatpush3.bf16.msra.mxu1 %v936_v20 }
  0x69   :  { %471 = vmatmul.mubr.f32.vlgmr.msra.gmra.mrb[2].mxu0 %v1112_v32  ;;  %v952_v32 = vpack.c.bf16 %v179_v45, %v178_v44 }
  0x6a   :  { %941 = vmatpush3.bf16.msra.mxu0 %v940_v27  ;;  %610 = vmatprep.mubr.f32.mxu0 %v255_v31 }
  0x6b   :  { %541 = vmatmul.mubr.f32.vlgmr.msra.gmra.mrb[2].mxu1 %v1117_v41  ;;  %943 = vmatprep.subr.bf16.mxu0 %v942_v28  ;;  %v954_v41 = vpack.c.bf16 %v197_v47, %v196_v46 }
  0x6e   :  { %945 = vmatpush3.bf16.msra.mxu0 %v944_v35 }
  0x6f   :  { %947 = vmatprep.subr.bf16.mxu0 %v946_v36 }
  0x72   :  { %949 = vmatpush3.bf16.msra.mxu0 %v948_v42 }
  0x73   :  { %951 = vmatprep.subr.bf16.mxu0 %v950_v43 }
  0x76   :  { %953 = vmatpush3.bf16.msra.mxu0 %v952_v32 }
  0x77   :  { %955 = vmatprep.subr.bf16.mxu0 %v954_v41 }
  0x7a   :  { %957 = vmatpush3.bf16.msra.mxu0 %v956_v52 }
  0x7b   :  { %959 = vmatprep.subr.bf16.mxu0 %v958_v10 }
  0x7e   :  { %961 = vmatpush3.bf16.msra.mxu0 %v960_v57 }
  0x7f   :  { %963 = vmatprep.subr.bf16.mxu0 %v962_v58 }
  0x82   :  { %965 = vmatpush3.bf16.msra.mxu0 %v964_v63 }
  0x83   :  { %967 = vmatprep.subr.bf16.mxu0 %v966_v0 }
  0x86   :  { %969 = vmatpush3.bf16.msra.mxu0 %v968_v3 }
  0x89   :  { %611 = vmatmul.mubr.f32.vlgmr.msra.gmra.mrb[4].mxu0 %v1121_v26 }
 0x11c   :  { %v667_v4 = vpop.f32.mrb[0].mxu0 }
 0x11d   :  { %v668_v6 = vpop.f32.mrb[1].mxu0 }
 0x11e   :  { %v702_v7 = vpop.f32.mrb[0].mxu1  ;;  %v669_v8 = vadd.f32 %v668_v6, %v667_v4 }
 0x11f   :  { %v703_v9 = vpop.f32.mrb[1].mxu1 }
 0x120   :  { %v704_v11 = vadd.f32 %v703_v9, %v702_v7  ;;  %v333_v12 = vadd.f32 %v669_v8, %v633_v5 }
 0x122   :  { %v403_v13 = vadd.f32 %v704_v11, %v333_v12 }
 0x13c   :  { %v737_v14 = vpop.f32.mrb[2].mxu0 }
 0x13d   :  { %v738_v15 = vpop.f32.mrb[3].mxu0 }
 0x13e   :  { %v772_v16 = vpop.f32.mrb[2].mxu1  ;;  %v739_v17 = vadd.f32 %v738_v15, %v737_v14 }
 0x13f   :  { %v773_v18 = vpop.f32.mrb[3].mxu1 }
 0x140   :  { %v774_v19 = vadd.f32 %v773_v18, %v772_v16  ;;  %v473_v20 = vadd.f32 %v739_v17, %v403_v13 }
 0x142   :  { %v543_v21 = vadd.f32 %v774_v19, %v473_v20 }
 0x15c   :  { %v807_v22 = vpop.f32.mrb[4].mxu0 }
 0x15d   :  { %v808_v23 = vpop.f32.mrb[5].mxu0 }
 0x15e   :  { %v809_v24 = vadd.f32 %v808_v23, %v807_v22 }
 0x160   :  { %v613_v25 = vadd.f32 %v809_v24, %v543_v21 }
 0x162   :  { %616 = vst [vmem:[#allocation7] sm:$0x3] %v613_v25 }
 0x163   :  { %1033 = shalt.err (!%p1030_p6)
}
 0x164   :  { %s1034_s15 = scalar_lea.hbm %s1146_s3, 32 }
 0x165   :  { %p1035_p7 = scmp.ne.s32.totalorder %s1146_s3, %s1034_s15  ;;  %p1038_p8 = scmp.lt.u32.totalorder %s1034_s15, %s1146_s3 }
 0x167   :  { %p1040_p9 = pnand %p1038_p8, %p1035_p7 }
 0x169   :  { %1043 = shalt.err (!%p1040_p9)
}
 0x16a   :  { %626 = dma.vmem_to_hbm [thread:$0]  %s624_s12, 32, %s1146_s3, [#allocation4]  }
 0x16b   :  { %1048 = dma.done.wait [#allocation4], 32  }
 0x16c   :  { %1049 = vsyncadd [#allocation4], 4294967264 }
 0x16d   :  { %630 = vsyncpa [#allocation3], 1 }
 0x16e   :  { %631 = vsyncpa [#allocation6], 1 }
 0x16f   :  { %632 = vsyncpa [#allocation4], 1 }

</bundles_post_ra>
